<compile_context>
chip_gen: v6e
topology: v6e:2x2x1
jax: 0.10.0
libtpu: 0.0.40
codegen_flags: <defaults>
</compile_context>

<pallas_src>
import functools

import jax
import jax.numpy as jnp
import numpy as np
from jax.experimental import pallas as pl
from jax.experimental.pallas import tpu as pltpu


def _litaug_avg_kernel(note_ref, lit_ref, wn_ref, wl_ref, b_ref, out_ref,
                       *, inv_num_docs):
    # lit_ref: (D, TB, H) -> mean over doc batches in f32.
    lit_sum = jnp.sum(lit_ref[...].astype(jnp.float32), axis=0)        # (TB, H)
    lit_mean = lit_sum * jnp.float32(inv_num_docs)
    note = note_ref[...].astype(jnp.float32)                           # (TB, H)
    # predictor(cat([note, lit], dim=1)) == note @ W[:H] + lit @ W[H:] + b
    logits = (jnp.dot(note, wn_ref[...], preferred_element_type=jnp.float32)
              + jnp.dot(lit_mean, wl_ref[...], preferred_element_type=jnp.float32)
              + b_ref[...])                                            # (TB, Lp)
    out_ref[...] = logits.astype(out_ref.dtype)


def _pick_batch_tile(B, D, H, Lp, in_itemsize, sub, vmem_budget):
    """Largest sublane-multiple batch tile whose double-buffered working set
    (lit slab + note + split weights + padded output) fits the VMEM budget."""
    def usage(tb):
        lit = D * tb * H * in_itemsize
        note = tb * H * in_itemsize
        w = 2 * H * Lp * 4
        out = tb * Lp * 4
        return 2 * (lit + note + w + out)     # double buffered by the pipeline

    tb = pl.cdiv(B, sub) * sub
    while tb > sub and usage(tb) > vmem_budget:
        tb = pl.cdiv(pl.cdiv(tb, 2), sub) * sub
    return tb, usage(tb)


def lit_aug_bienc_average_forward(note_reps, lit_reps, pred_w, pred_b,
                                  *, vmem_budget_bytes=28 * 1024 * 1024):
    """LitAugPredictorBienc.forward with strategy='average'.

    note_reps: (B, H); lit_reps: (D, B, H) stacked pooled doc-batch reps
    (D may be 0); pred_w: (2H, L) (= torch weight.T); pred_b: (L,).
    Returns (None, logits[B, L]) like the PyTorch module (logits in float32).
    """
    B, H = note_reps.shape
    L = pred_w.shape[1]

    # Mirror the module: >=50 doc batches -> keep first 50; 0 -> one zero rep.
    if lit_reps.shape[0] >= 50:
        lit_reps = lit_reps[:50]
    if lit_reps.shape[0] == 0:
        lit_reps = jnp.zeros((1, B, H), note_reps.dtype)
    D = lit_reps.shape[0]

    # Lane-dense output / MXU-N dim: pad L to a multiple of 128.
    Lp = pl.cdiv(max(L, 1), 128) * 128
    w = pred_w.astype(jnp.float32)
    b = pred_b.astype(jnp.float32)
    if Lp != L:
        w = jnp.pad(w, ((0, 0), (0, Lp - L)))
        b = jnp.pad(b, (0, Lp - L))
    w_note = w[:H, :]          # (H, Lp)
    w_lit = w[H:, :]           # (H, Lp)
    b2 = b.reshape(1, Lp)

    in_itemsize = jnp.dtype(lit_reps.dtype).itemsize
    sub = 8 if jnp.dtype(note_reps.dtype).itemsize >= 4 else 16   # sublane packing
    tb, usage = _pick_batch_tile(B, D, H, Lp, in_itemsize, sub, vmem_budget_bytes)

    Bp = pl.cdiv(B, tb) * tb
    note_p, lit_p = note_reps, lit_reps
    if Bp != B:
        note_p = jnp.pad(note_p, ((0, Bp - B), (0, 0)))
        lit_p = jnp.pad(lit_p, ((0, 0), (0, Bp - B), (0, 0)))

    kern = functools.partial(_litaug_avg_kernel, inv_num_docs=1.0 / float(D))

    cost = pl.CostEstimate(
        flops=D * Bp * H + 2 * Bp * (2 * H) * Lp,
        transcendentals=0,
        bytes_accessed=(D * Bp * H + Bp * H) * in_itemsize
        + 2 * H * Lp * 4 + Bp * Lp * 4,
    )

    out = pl.pallas_call(
        kern,
        out_shape=jax.ShapeDtypeStruct((Bp, Lp), jnp.float32),
        grid=(Bp // tb,),
        in_specs=[
            pl.BlockSpec((tb, H), lambda i: (i, 0)),          # note reps
            pl.BlockSpec((D, tb, H), lambda i: (0, i, 0)),    # full doc stack slab
            pl.BlockSpec((H, Lp), lambda i: (0, 0)),          # W[:H]
            pl.BlockSpec((H, Lp), lambda i: (0, 0)),          # W[H:]
            pl.BlockSpec((1, Lp), lambda i: (0, 0)),          # bias
        ],
        out_specs=pl.BlockSpec((tb, Lp), lambda i: (i, 0)),   # lane-dense logits
        compiler_params=pltpu.CompilerParams(
            dimension_semantics=("parallel",),
            vmem_limit_bytes=max(32 * 1024 * 1024, usage + (4 << 20)),
        ),
        cost_estimate=cost,
    )(note_p, lit_p, w_note, w_lit, b2)

    # TODO(synk): strategies 'weightaverage' / 'softvote' / 'weightvote' and the
    # BERT encoders / tokenizer themselves are not implemented here.
    return None, out[:B, :L]


def _reference(note_reps, lit_reps, w, b):
    if lit_reps.shape[0] == 0:
        lit_reps = jnp.zeros((1,) + note_reps.shape, note_reps.dtype)
    lit = jnp.mean(lit_reps.astype(jnp.float32), axis=0)
    rep = jnp.concatenate([note_reps.astype(jnp.float32), lit], axis=1)
    return rep @ w + b


if __name__ == "__main__":
    # Small shapes consistent with the forward:
    #   batch B=2, D=3 pubmed doc batches, hidden H=32, num_labels L=4
    B, D, H, L = 2, 3, 32, 4
    key = jax.random.PRNGKey(0)
    k1, k2, k3, k4 = jax.random.split(key, 4)

    # TODO(synk): BERT encoders / tokenizer for raw text have no Pallas
    # equivalent; their pooled outputs are supplied as precomputed inputs.
    note_reps = jax.random.normal(k1, (B, H), jnp.float32)      # note BERT pooled out
    lit_reps = jax.random.normal(k2, (D, B, H), jnp.float32)    # per-doc-batch pooled out

    # predictor = nn.Linear(2*H, L): deterministic synthetic params
    pred_w = jax.random.normal(k3, (2 * H, L), jnp.float32) * 0.1
    pred_b = jax.random.normal(k4, (L,), jnp.float32) * 0.1

    loss, logits = lit_aug_bienc_average_forward(note_reps, lit_reps,
                                                 pred_w, pred_b)
    logits = jax.block_until_ready(logits)

    ref = _reference(note_reps, lit_reps, pred_w, pred_b)
    np.testing.assert_allclose(np.asarray(logits), np.asarray(ref),
                               rtol=1e-5, atol=1e-5)
    assert loss is None
    assert logits.shape == (B, L)

    # Also exercise the empty-doc-list path (module appends a zero rep).
    empty_lit = jnp.zeros((0, B, H), jnp.float32)
    _, logits0 = lit_aug_bienc_average_forward(note_reps, empty_lit,
                                               pred_w, pred_b)
    logits0 = jax.block_until_ready(logits0)
    ref0 = _reference(note_reps, empty_lit, pred_w, pred_b)
    np.testing.assert_allclose(np.asarray(logits0), np.asarray(ref0),
                               rtol=1e-5, atol=1e-5)

    print("KERNEL_OK")
</pallas_src>

<mosaic_0001>
module attributes {stable_mosaic.version = 11 : i64} {
  func.func @_litaug_avg_kernel(%arg0: i32, %arg1: memref<8x32xf32, #tpu.memory_space<vmem>>, %arg2: memref<3x8x32xf32, #tpu.memory_space<vmem>>, %arg3: memref<32x128xf32, #tpu.memory_space<vmem>>, %arg4: memref<32x128xf32, #tpu.memory_space<vmem>>, %arg5: memref<1x128xf32, #tpu.memory_space<vmem>>, %arg6: memref<8x128xf32, #tpu.memory_space<vmem>>) attributes {dimension_semantics = [#tpu.dimension_semantics<parallel>], iteration_bounds = array<i64: 1>, scalar_prefetch = 0 : i64, scratch_operands = 0 : i64, tpu.core_type = #tpu.core_type<tc>, window_params = [{transform_indices = @transform_0, window_bounds = array<i64: 8, 32>}, {transform_indices = @transform_1, window_bounds = array<i64: 3, 8, 32>}, {pipeline_mode = #tpu.pipeline_mode<synchronous>, transform_indices = @transform_2, window_bounds = array<i64: 32, 128>}, {pipeline_mode = #tpu.pipeline_mode<synchronous>, transform_indices = @transform_3, window_bounds = array<i64: 32, 128>}, {pipeline_mode = #tpu.pipeline_mode<synchronous>, transform_indices = @transform_4, window_bounds = array<i64: 1, 128>}, {transform_indices = @transform_5, window_bounds = array<i64: 8, 128>}]} {
    %c0 = arith.constant 0 : index
    %c0_0 = arith.constant 0 : index
    %c0_1 = arith.constant 0 : index
    %0 = vector.load %arg2[%c0, %c0_0, %c0_1] : memref<3x8x32xf32, #tpu.memory_space<vmem>>, vector<3x8x32xf32>
    %cst = arith.constant dense<0.000000e+00> : vector<8x32xf32>
    %1 = vector.multi_reduction <add>, %0, %cst [0] : vector<3x8x32xf32> to vector<8x32xf32>
    %cst_2 = arith.constant 0.333333343 : f32
    %2 = vector.broadcast %cst_2 : f32 to vector<8x32xf32>
    %3 = arith.mulf %1, %2 : vector<8x32xf32>
    %c0_3 = arith.constant 0 : index
    %c0_4 = arith.constant 0 : index
    %4 = vector.load %arg1[%c0_3, %c0_4] : memref<8x32xf32, #tpu.memory_space<vmem>>, vector<8x32xf32>
    %c0_5 = arith.constant 0 : index
    %c0_6 = arith.constant 0 : index
    %5 = vector.load %arg3[%c0_5, %c0_6] : memref<32x128xf32, #tpu.memory_space<vmem>>, vector<32x128xf32>
    %cst_7 = arith.constant dense<0.000000e+00> : vector<8x128xf32>
    %6 = tpu.matmul %4, %5, %cst_7 {dimension_numbers = #tpu.dot_dimension_numbers<[1], [0], [0], [1], [0, 0, 1, 1], [], []>} : vector<8x32xf32>, vector<32x128xf32>, vector<8x128xf32> -> vector<8x128xf32>
    %c0_8 = arith.constant 0 : index
    %c0_9 = arith.constant 0 : index
    %7 = vector.load %arg4[%c0_8, %c0_9] : memref<32x128xf32, #tpu.memory_space<vmem>>, vector<32x128xf32>
    %cst_10 = arith.constant dense<0.000000e+00> : vector<8x128xf32>
    %8 = tpu.matmul %3, %7, %cst_10 {dimension_numbers = #tpu.dot_dimension_numbers<[1], [0], [0], [1], [0, 0, 1, 1], [], []>} : vector<8x32xf32>, vector<32x128xf32>, vector<8x128xf32> -> vector<8x128xf32>
    %9 = arith.addf %6, %8 : vector<8x128xf32>
    %c0_11 = arith.constant 0 : index
    %c0_12 = arith.constant 0 : index
    %10 = vector.load %arg5[%c0_11, %c0_12] : memref<1x128xf32, #tpu.memory_space<vmem>>, vector<1x128xf32>
    %11 = vector.broadcast %10 : vector<1x128xf32> to vector<8x128xf32>
    %12 = arith.addf %9, %11 : vector<8x128xf32>
    %c0_13 = arith.constant 0 : index
    %c0_14 = arith.constant 0 : index
    %13 = vector.load %arg6[%c0_13, %c0_14] : memref<8x128xf32, #tpu.memory_space<vmem>>, vector<8x128xf32>
    tpu.vector_store %arg6[%c0_13, %c0_14], %12 {strides = array<i32>} : memref<8x128xf32, #tpu.memory_space<vmem>>, vector<8x128xf32>,
    return
  }
  func.func @transform_0(%arg0: i32) -> (i32, i32) {
    %c0_i32 = arith.constant 0 : i32
    %c0_i32_0 = arith.constant 0 : i32
    return %arg0, %c0_i32 : i32, i32
  }
  func.func @transform_1(%arg0: i32) -> (i32, i32, i32) {
    %c0_i32 = arith.constant 0 : i32
    %c0_i32_0 = arith.constant 0 : i32
    %c0_i32_1 = arith.constant 0 : i32
    return %c0_i32, %arg0, %c0_i32_0 : i32, i32, i32
  }
  func.func @transform_2(%arg0: i32) -> (i32, i32) {
    %c0_i32 = arith.constant 0 : i32
    %c0_i32_0 = arith.constant 0 : i32
    %c0_i32_1 = arith.constant 0 : i32
    return %c0_i32, %c0_i32_0 : i32, i32
  }
  func.func @transform_3(%arg0: i32) -> (i32, i32) {
    %c0_i32 = arith.constant 0 : i32
    %c0_i32_0 = arith.constant 0 : i32
    %c0_i32_1 = arith.constant 0 : i32
    return %c0_i32, %c0_i32_0 : i32, i32
  }
  func.func @transform_4(%arg0: i32) -> (i32, i32) {
    %c0_i32 = arith.constant 0 : i32
    %c0_i32_0 = arith.constant 0 : i32
    %c0_i32_1 = arith.constant 0 : i32
    return %c0_i32, %c0_i32_0 : i32, i32
  }
  func.func @transform_5(%arg0: i32) -> (i32, i32) {
    %c0_i32 = arith.constant 0 : i32
    %c0_i32_0 = arith.constant 0 : i32
    return %arg0, %c0_i32 : i32, i32
  }
}

</mosaic_0001>

<bundles_post_ra>
// kernel: tpu_custom_call.1
= control target key start
LH: loop header
LB: loop body
LE: loop exit
PB: predicated region body
PF: predicated region fallthrough
CT: control target
= control target key end

     0   :  { %10 = vsyncpa [#allocation3], 0  ;;  %s488_s0 = inlined_call_operand.hbm [shape: f32[8,32], index: 0, kind: input, shape index: {}]   ;;  %s489_s1 = inlined_call_operand.hbm [shape: f32[3,8,32], index: 1, kind: input, shape index: {}]   ;;  %s490_s2 = inlined_call_operand.hbm [shape: f32[32,128], index: 2, kind: input, shape index: {}]   ;;  %s491_s3 = inlined_call_operand.hbm [shape: f32[32,128], index: 3, kind: input, shape index: {}]   ;;  %s492_s4 = inlined_call_operand.vmem [shape: f32[1,128], index: 4, kind: input, shape index: {}]   ;;  %s493_s5 = inlined_call_operand.hbm [shape: f32[8,128], index: 5, kind: output, shape index: {}]  }
   0x1   :  { %11 = vsyncpa [#allocation6], 0 }
   0x2   :  { %12 = vsyncpa [#allocation9], 0 }
   0x3   :  { %13 = vsyncpa [#allocation4], 0  ;;  %s417_s18 = smov [#allocation5]  }
   0x4   :  { %s29_s19 = sshll.u32 %s417_s18, 4  ;;  %s30_s19 = int_to_ptr.vmem [resolvable:$true] %s29_s19 }
   0x5   :  { %s317_s20 = scalar_lea.vmem %s30_s19, 384  ;;  %p322_p1 = scmp.lt.s32.totalorder %s30_s19, %s30_s19 }
   0x6   :  { %p318_p0 = scmp.ne.s32.totalorder %s30_s19, %s317_s20  ;;  %p323_p2 = scmp.lt.s32.totalorder %s317_s20, %s317_s20 }
   0x8   :  { %p324_p3 = por %p323_p2, %p322_p1 }
   0xa   :  { %p325_p4 = pnand %p324_p3, %p318_p0 }
   0xc   :  { %328 = shalt.err (!%p325_p4)
}
   0xd   :  { %s418_s21 = smov 128   ;;  %s419_s22 = smov 8  }
   0xe   :  { %35 = dma.hbm_to_vmem [thread:$0]  %s489_s1, 384, %s30_s19, [#allocation6], %s418_s21, %s418_s21, %s419_s22  }
   0xf   :  { %s420_s25 = smov [#allocation2]   ;;  %s421_s27 = smov [#allocation7]  }
  0x10   :  { %s20_s26 = sshll.u32 %s420_s25, 4  ;;  %s41_s28 = sshll.u32 %s421_s27, 4  ;;  %s21_s26 = int_to_ptr.vmem [resolvable:$true] %s20_s26  ;;  %s42_s28 = int_to_ptr.vmem [resolvable:$true] %s41_s28 }
  0x11   :  { %s337_s29 = scalar_lea.vmem %s21_s26, 128  ;;  %p342_p6 = scmp.lt.s32.totalorder %s21_s26, %s21_s26 }
  0x12   :  { %p338_p5 = scmp.ne.s32.totalorder %s21_s26, %s337_s29  ;;  %p343_p7 = scmp.lt.s32.totalorder %s337_s29, %s337_s29 }
  0x14   :  { %p344_p8 = por %p343_p7, %p342_p6 }
  0x16   :  { %p345_p9 = pnand %p344_p8, %p338_p5 }
  0x18   :  { %348 = shalt.err (!%p345_p9)
}
  0x19   :  { %23 = dma.hbm_to_vmem [thread:$0]  %s488_s0, 128, %s21_s26, [#allocation3]  }
  0x1a   :  { %s357_s7 = scalar_lea.vmem %s42_s28, 512  ;;  %p362_p11 = scmp.lt.s32.totalorder %s42_s28, %s42_s28 }
  0x1b   :  { %p358_p10 = scmp.ne.s32.totalorder %s42_s28, %s357_s7  ;;  %p363_p12 = scmp.lt.s32.totalorder %s357_s7, %s357_s7 }
  0x1d   :  { %p364_p13 = por %p363_p12, %p362_p11 }
  0x1f   :  { %p365_p0 = pnand %p364_p13, %p358_p10 }
  0x21   :  { %368 = shalt.err (!%p365_p0)
}
  0x22   :  { %47 = dma.hbm_to_vmem [thread:$0]  %s490_s2, 512, %s42_s28, [#allocation6], %s418_s21, %s418_s21, %s419_s22  }
  0x23   :  { %s422_s9 = smov [#allocation8]  }
  0x24   :  { %s53_s10 = sshll.u32 %s422_s9, 4  ;;  %s54_s10 = int_to_ptr.vmem [resolvable:$true] %s53_s10 }
  0x25   :  { %s377_s11 = scalar_lea.vmem %s54_s10, 512  ;;  %p382_p2 = scmp.lt.s32.totalorder %s54_s10, %s54_s10 }
  0x26   :  { %p378_p1 = scmp.ne.s32.totalorder %s54_s10, %s377_s11  ;;  %p383_p3 = scmp.lt.s32.totalorder %s377_s11, %s377_s11 }
  0x28   :  { %p384_p4 = por %p383_p3, %p382_p2 }
  0x2a   :  { %p385_p5 = pnand %p384_p4, %p378_p1 }
  0x2c   :  { %388 = shalt.err (!%p385_p5)
}
  0x2d   :  { %59 = dma.hbm_to_vmem [thread:$0]  %s491_s3, 512, %s54_s10, [#allocation9], %s418_s21, %s418_s21, %s419_s22  }
  0x2e   :  { %409 = dma.done.wait [#allocation3], 128  }
  0x2f   :  { %410 = vsyncadd [#allocation3], 4294967168 }
  0x30   :  { %411 = dma.done.wait [#allocation6], 896  }
  0x31   :  { %412 = vsyncadd [#allocation6], 4294966400 }
  0x32   :  { %413 = dma.done.wait [#allocation9], 512  }
  0x33   :  { %414 = vsyncadd [#allocation9], 4294966784  ;;  %v423_v0 = vmov 0.0   ;;  %vm424_vm0 = vmmov 0   ;;  %v92_v1 = vld [vmem:[#allocation8 + $0x18] sm:$0xff]  ;;  %v91_v3 = vld [vmem:[#allocation8 + $0x10] sm:$0xff] }
  0x34   :  { %278 = vmatprep.subr.mxu0 %v423_v0  ;;  %289 = vmatprep.subr.mxu1 %v423_v0  ;;  %v88_v2 = vld [vmem:[#allocation7 + $0x18] sm:$0xff]  ;;  %vm77_vm1 = vcmask 261120   ;;  %v87_v4 = vld [vmem:[#allocation7 + $0x10] sm:$0xff]  ;;  %v90_v5 = vld [vmem:[#allocation8 + $0x8] sm:$0xff]  ;;  %s425_s13 = smov [#allocation10]  }
  0x35   :  { %286 = vmatprep.mubr.msk.f32.mxu0 %vm424_vm0, %v423_v0  ;;  %297 = vmatprep.mubr.msk.f32.mxu1 %vm424_vm0, %v423_v0  ;;  %v86_v6 = vld [vmem:[#allocation7 + $0x8] sm:$0xff]  ;;  %v75_v8 = vld [vmem:[#allocation5 + $0x8] sm:$0xff]  ;;  %v76_v9 = vld [vmem:[#allocation5 + $0x10] sm:$0xff]  ;;  %s254_s14 = sshll.u32 %s425_s13, 4  ;;  %s255_s14 = int_to_ptr.vmem [resolvable:$true] %s254_s14 }
  0x36   :  { %279 = vmatpush3.msra.mxu0 %v92_v1  ;;  %290 = vmatpush3.msra.mxu1 %v88_v2  ;;  %v74_v7 = vld [vmem:[#allocation5] sm:$0xff]  ;;  %v89_v11 = vld [vmem:[#allocation8] sm:$0xff]  ;;  %v79_v13 = vsel %vm77_vm1, %v75_v8, 0.0  ;;  %v81_v14 = vsel %vm77_vm1, %v76_v9, 0.0  ;;  %s389_s15 = scalar_lea.vmem %s255_s14, 128  ;;  %p394_p7 = scmp.lt.s32.totalorder %s255_s14, %s255_s14 }
  0x37   :  { %280 = vmatprep.subr.mxu0 %v423_v0  ;;  %291 = vmatprep.subr.mxu1 %v423_v0  ;;  %v78_v10 = vsel %vm77_vm1, %v74_v7, 0.0  ;;  %v85_v12 = vld [vmem:[#allocation7] sm:$0xff]  ;;  %p390_p6 = scmp.ne.s32.totalorder %s255_s14, %s389_s15  ;;  %p395_p8 = scmp.lt.s32.totalorder %s389_s15, %s389_s15 }
  0x38   :  { %281 = vmatpush3.msra.mxu0 %v91_v3  ;;  %292 = vmatpush3.msra.mxu1 %v87_v4  ;;  %v80_v15 = vadd.f32 %v79_v13, %v78_v10  ;;  %v84_v16 = vld [vmem:[#allocation2] sm:$0xff] }
  0x39   :  { %282 = vmatprep.subr.mxu0 %v423_v0  ;;  %293 = vmatprep.subr.mxu1 %v423_v0  ;;  %v267_v22 = vld [vmem:[%s492_s4] ss:$0 sm:$0xff]  ;;  %p396_p9 = por %p395_p8, %p394_p7 }
  0x3a   :  { %283 = vmatpush3.msra.mxu0 %v90_v5  ;;  %294 = vmatpush3.msra.mxu1 %v86_v6  ;;  %v82_v17 = vadd.f32 %v81_v14, %v80_v15 }
  0x3b   :  { %284 = vmatprep.subr.mxu0 %v423_v0  ;;  %295 = vmatprep.subr.mxu1 %v423_v0  ;;  %p397_p10 = pnand %p396_p9, %p390_p6 }
  0x3c   :  { %285 = vmatpush3.msra.mxu0 %v89_v11  ;;  %296 = vmatpush3.msra.mxu1 %v85_v12  ;;  %v83_v18 = vmul.f32 0.33333334, %v82_v17 }
  0x3d   :  { %298 = vmatmul.mubr.msk.f32.vlgmr.msra.gmra.mxu1 %vm77_vm1, %v84_v16 }
  0x3e   :  { %287 = vmatmul.mubr.msk.f32.vlgmr.msra.gmra.mxu0 %vm77_vm1, %v83_v18 }
  0xfd   :  { %v235_v19 = vpop.f32.mrf.mxu1 }
  0xfe   :  { %v162_v21 = vpop.f32.mrf.mxu0 }
  0xff   :  { %v299_v20 = vpop.f32.mrf.mxu1  ;;  %v236_v23 = vadd.f32 %v235_v19, %v162_v21 }
 0x100   :  { %v288_v24 = vpop.f32.mrf.mxu0 }
 0x101   :  { %v246_v25 = vadd.f32 %v267_v22, %v236_v23 }
 0x103   :  { %247 = vst [vmem:[#allocation10] sm:$0xff] %v246_v25 }
 0x104   :  { %400 = shalt.err (!%p397_p10)
}
 0x105   :  { %257 = dma.vmem_to_hbm [thread:$0]  %s255_s14, 128, %s493_s5, [#allocation4]  }
 0x106   :  { %415 = dma.done.wait [#allocation4], 128  }
 0x107   :  { %416 = vsyncadd [#allocation4], 4294967168 }
 0x108   :  { %261 = vsyncpa [#allocation3], 1 }
 0x109   :  { %262 = vsyncpa [#allocation6], 1 }
 0x10a   :  { %263 = vsyncpa [#allocation9], 1 }
 0x10b   :  { %264 = vsyncpa [#allocation4], 1 }

</bundles_post_ra>
